<compile_context>
chip_gen: v6e
topology: v6e:2x2x1
jax: 0.10.0
libtpu: 0.0.40
codegen_flags: <defaults>
</compile_context>

<pallas_src>
import functools

import jax
import jax.numpy as jnp
from jax import lax
from jax.experimental import pallas as pl
from jax.experimental.pallas import tpu as pltpu

_MiB = 1 << 20


# --------------------------------------------------------------------------
# Per-generation budgets
# --------------------------------------------------------------------------
def _vmem_capacity_bytes():
    try:
        return int(pltpu.get_tpu_info().vmem_capacity_bytes)
    except Exception:
        return 64 * _MiB  # conservative fallback (v7x per-TC VMEM)


def _gen_budgets():
    cap = _vmem_capacity_bytes()
    if cap >= 96 * _MiB:  # v5e / v6e: 128 MiB physical VMEM
        return dict(fused_max_bytes=40 * _MiB, tile_budget=20 * _MiB,
                    vmem_cap=96 * _MiB)
    # v7x: 64 MiB per TensorCore -> leave headroom for compiler scratch.
    return dict(fused_max_bytes=22 * _MiB, tile_budget=13 * _MiB,
                vmem_cap=52 * _MiB)


def _maybe_buffered_spec(block_shape, index_map, n_buf):
    """BlockSpec with an n-deep input pipeline where the API supports it."""
    if n_buf is not None and n_buf != 2 and hasattr(pl, "Buffered"):
        try:
            return pl.BlockSpec(block_shape, index_map,
                                pipeline_mode=pl.Buffered(n_buf))
        except TypeError:
            pass
    return pl.BlockSpec(block_shape, index_map)


# --------------------------------------------------------------------------
# Kernels
# --------------------------------------------------------------------------
def _fused_kernel(x_ref, w1_ref, w2_ref, out_ref):
    """x, W1, W2 fully VMEM-resident: sum -> mean -> MLP -> softmax -> x@y."""
    b = x_ref.shape[0]
    xsum = jnp.sum(x_ref[...].astype(jnp.float32), axis=0, keepdims=True)  # (1, f)
    y0 = xsum * (1.0 / b)                                                   # mean
    # h = relu(W1 @ y0): contract f against dim 1 of W1 (e, f) -- no transpose.
    h = lax.dot_general(y0, w1_ref[...].astype(jnp.float32),
                        dimension_numbers=(((1,), (1,)), ((), ())),
                        preferred_element_type=jnp.float32)                 # (1, e)
    h = jnp.maximum(h, 0.0)
    z = lax.dot_general(h, w2_ref[...].astype(jnp.float32),
                        dimension_numbers=(((1,), (1,)), ((), ())),
                        preferred_element_type=jnp.float32)                 # (1, f)
    z = z - jnp.max(z, axis=-1, keepdims=True)
    p = jnp.exp(z)
    y = p / jnp.sum(p, axis=-1, keepdims=True)       # exact normalization (runs once)
    # out[0, b] = sum_f y[f] * x[b, f] -> lane-dense (1, b) output row.
    out = lax.dot_general(y.astype(x_ref.dtype), x_ref[...],
                          dimension_numbers=(((1,), (1,)), ((), ())),
                          preferred_element_type=jnp.float32)               # (1, b)
    out_ref[...] = out.astype(out_ref.dtype)


def _sum_kernel(x_ref, psum_ref, acc_ref, *, batch, tile_rows, n_tiles,
                tiles_per_split, mask_tail):
    """Streaming pass 1: per-split partial column sums of x (f32)."""
    j = pl.program_id(1)

    @pl.when(j == 0)
    def _():
        acc_ref[...] = jnp.zeros_like(acc_ref)

    if mask_tail:
        # Only the single global tail tile can be partial; everything else runs
        # the unmasked fast path (no per-tile iota/compare/select).
        g = pl.program_id(0) * tiles_per_split + j          # global tile index
        is_tail = g == (n_tiles - 1)

        @pl.when(is_tail)
        def _():
            row = lax.broadcasted_iota(jnp.int32, (tile_rows, 1), 0) + g * tile_rows
            xm = jnp.where(row < batch, x_ref[...].astype(jnp.float32), 0.0)
            acc_ref[...] += jnp.sum(xm, axis=0, keepdims=True)

        @pl.when(jnp.logical_not(is_tail))
        def _():
            acc_ref[...] += jnp.sum(x_ref[...].astype(jnp.float32),
                                    axis=0, keepdims=True)
    else:
        acc_ref[...] += jnp.sum(x_ref[...].astype(jnp.float32),
                                axis=0, keepdims=True)

    @pl.when(j == tiles_per_split - 1)
    def _():
        # Broadcast the (1, f) partial over this split's 8-sublane output block.
        psum_ref[...] = jnp.broadcast_to(acc_ref[...], psum_ref.shape)


def _scale_kernel(y_ref, x_ref, out_ref):
    """Streaming pass 2: out[0, tile] = y . x_tile  (lane-dense (1, TB) block).

    NOTE: rows >= batch in the (single) partial tail tile contain garbage, but
    each output lane is an independent dot product, so garbage only lands in
    output lanes >= batch which the wrapper slices off.  Do NOT add any
    cross-lane reduction over the tile axis here or that property breaks.

    The dot contracts dim 1 of the (TB, f) tile; this lowers as a native
    transposed-RHS MXU push (equivalent to pl.dot(y, x, trans_b=True)) — no
    materialized transpose of the x tile.
    """
    y = y_ref[...].astype(x_ref.dtype)                                      # (1, f)
    out = lax.dot_general(y, x_ref[...],
                          dimension_numbers=(((1,), (1,)), ((), ())),
                          preferred_element_type=jnp.float32)               # (1, TB)
    out_ref[...] = out.astype(out_ref.dtype)


# --------------------------------------------------------------------------
# Wrapper
# --------------------------------------------------------------------------
def se_basic_forward(x, w1, w2, *, force_stream=False, tile_rows=None):
    b, f = x.shape
    e = w1.shape[0]
    itemsize = x.dtype.itemsize
    budgets = _gen_budgets()

    fused_bytes = x.nbytes + w1.nbytes + w2.nbytes
    use_fused = (not force_stream) and (fused_bytes <= budgets["fused_max_bytes"]
                                        or b < 256)
    # TODO(synk): feature-dim tiling for extreme f (where even a 128-row batch
    # tile exceeds VMEM) is not implemented; such shapes run best-effort.

    if use_fused:
        vmem_limit = int(min(
            budgets["vmem_cap"],
            max(16 * _MiB,
                2 * x.nbytes + w1.nbytes + w2.nbytes + 4 * (b + 4 * f) + 4 * _MiB)))
        out = pl.pallas_call(
            _fused_kernel,
            out_shape=jax.ShapeDtypeStruct((1, b), jnp.float32),
            compiler_params=pltpu.CompilerParams(vmem_limit_bytes=vmem_limit),
            cost_estimate=pl.CostEstimate(
                flops=int(3 * b * f + 4 * e * f + 5 * f),
                transcendentals=int(f),
                bytes_accessed=int(x.nbytes + w1.nbytes + w2.nbytes + 4 * b)),
        )(x, w1, w2)
        return jnp.squeeze(out[0, :b])

    # ----------------------- streaming path (large x) -----------------------
    if tile_rows is None:
        tile_rows = (budgets["tile_budget"] // max(1, f * itemsize)) // 128 * 128
        tile_rows = max(128, tile_rows)
        tile_rows = min(tile_rows, max(128, (b // 128) * 128))
    tb = int(tile_rows)
    nb = int(pl.cdiv(b, tb))
    tile_bytes = tb * f * itemsize
    n_buf = 3 if (3 * tile_bytes + 8 * _MiB) <= budgets["vmem_cap"] else 2

    # Split the batch-tile range across both TensorCores (v7x megacore); on
    # v5e/v6e this is just a serial loop of length <= 2 (free).
    n_split = 2 if (nb % 2 == 0 and nb >= 4) else 1
    npj = nb // n_split
    padded_b = nb * tb
    mask_tail = (b % tb) != 0

    vmem_limit = int(min(
        budgets["vmem_cap"],
        max(16 * _MiB,
            n_buf * tile_bytes + 4 * (16 * f + f + 2 * tb + 2 * f) + 2 * _MiB)))

    def _x_index_pass1(s, j):
        return (s * npj + j, 0)

    # ---- pass 1: per-split partial column sums of x ----
    psum = pl.pallas_call(
        functools.partial(_sum_kernel, batch=b, tile_rows=tb, n_tiles=nb,
                          tiles_per_split=npj, mask_tail=mask_tail),
        out_shape=jax.ShapeDtypeStruct((n_split * 8, f), jnp.float32),
        grid_spec=pltpu.PrefetchScalarGridSpec(
            num_scalar_prefetch=0,
            grid=(n_split, npj),
            in_specs=[_maybe_buffered_spec((tb, f), _x_index_pass1, n_buf)],
            out_specs=pl.BlockSpec((8, f), lambda s, j: (s, 0)),
            scratch_shapes=[pltpu.VMEM((1, f), jnp.float32)],
        ),
        compiler_params=pltpu.CompilerParams(
            dimension_semantics=("parallel", "arbitrary"),
            vmem_limit_bytes=vmem_limit),
        cost_estimate=pl.CostEstimate(
            flops=int(b * f), transcendentals=0,
            bytes_accessed=int(x.nbytes + n_split * 8 * f * 4)),
    )(x)

    # ---- tiny MLP + softmax hoisted to plain JAX (keeps W1/W2 and their
    #      double-buffers out of the streaming pipeline entirely) ----
    xsum = jnp.sum(psum[0::8, :], axis=0)                    # fold split partials -> (f,)
    y0 = xsum * (1.0 / b)
    h = jnp.maximum(w1.astype(jnp.float32) @ y0, 0.0)
    z = w2.astype(jnp.float32) @ h
    y = jax.nn.softmax(z).reshape(1, f)                      # exact normalization

    # ---- pass 2: out = einsum('bf,f->b', x, y), lane-dense (1, padded_b) ----
    out = pl.pallas_call(
        _scale_kernel,
        out_shape=jax.ShapeDtypeStruct((1, padded_b), jnp.float32),
        grid_spec=pltpu.PrefetchScalarGridSpec(
            num_scalar_prefetch=0,
            grid=(nb,),
            in_specs=[
                pl.BlockSpec((1, f), lambda j: (0, 0)),      # gate vector (tiny, resident)
                _maybe_buffered_spec((tb, f), lambda j: (j, 0), n_buf),
            ],
            out_specs=pl.BlockSpec((1, tb), lambda j: (0, j)),
        ),
        compiler_params=pltpu.CompilerParams(
            dimension_semantics=("parallel",),               # megacore-shardable
            vmem_limit_bytes=vmem_limit),
        cost_estimate=pl.CostEstimate(
            flops=int(2 * b * f), transcendentals=0,
            bytes_accessed=int(x.nbytes + 4 * f + 4 * padded_b)),
    )(y, x)

    return jnp.squeeze(out[0, :b])


# --------------------------------------------------------------------------
# Params / reference / test
# --------------------------------------------------------------------------
def init_params(key, nFeat, reduction=4):
    nEmbed = nFeat // reduction
    k1, k2 = jax.random.split(key)
    # nn.Linear weight shapes: (out_features, in_features), no bias.
    w1 = jax.random.normal(k1, (nEmbed, nFeat), jnp.float32) * (1.0 / jnp.sqrt(nFeat))
    w2 = jax.random.normal(k2, (nFeat, nEmbed), jnp.float32) * (1.0 / jnp.sqrt(nEmbed))
    return w1, w2


def _reference(x, w1, w2):
    y0 = jnp.mean(x, axis=0)
    h = jnp.maximum(w1 @ y0, 0.0)
    y = jax.nn.softmax(w2 @ h)
    return jnp.squeeze(x @ y)


if __name__ == "__main__":
    key = jax.random.PRNGKey(0)
    kx, kw = jax.random.split(key)

    # Tolerances reflect TPU default matmul precision only (softmax is exact now).
    tol = dict(atol=2e-3, rtol=2e-3)

    # 1) Small shape -> fused single-pass kernel (the module's typical use).
    b, nFeat, reduction = 8, 32, 4
    x = jax.random.normal(kx, (b, nFeat), jnp.float32)
    w1, w2 = init_params(kw, nFeat, reduction)
    out = se_basic_forward(x, w1, w2)
    jax.block_until_ready(out)
    ref = _reference(x, w1, w2)
    assert out.shape == (b,), out.shape
    assert jnp.allclose(out, ref, **tol), (out, ref)

    # 2) Streaming path, odd tile count + partial tail tile (mask path).
    b2, f2 = 300, 256
    x2 = jax.random.normal(jax.random.PRNGKey(1), (b2, f2), jnp.float32)
    w1b, w2b = init_params(jax.random.PRNGKey(2), f2, 4)
    out2 = se_basic_forward(x2, w1b, w2b, force_stream=True, tile_rows=128)
    jax.block_until_ready(out2)
    ref2 = _reference(x2, w1b, w2b)
    assert out2.shape == (b2,), out2.shape
    assert jnp.allclose(out2, ref2, **tol), float(jnp.max(jnp.abs(out2 - ref2)))

    # 3) Streaming path, even tile count -> 2-way TensorCore split in pass 1.
    b3 = 512
    x3 = jax.random.normal(jax.random.PRNGKey(3), (b3, f2), jnp.float32)
    out3 = se_basic_forward(x3, w1b, w2b, force_stream=True, tile_rows=128)
    jax.block_until_ready(out3)
    ref3 = _reference(x3, w1b, w2b)
    assert out3.shape == (b3,), out3.shape
    assert jnp.allclose(out3, ref3, **tol), float(jnp.max(jnp.abs(out3 - ref3)))

    print("KERNEL_OK")
</pallas_src>

<mosaic_0001>
module attributes {stable_mosaic.version = 11 : i64} {
  func.func @_fused_kernel(%arg0: memref<8x32xf32, #tpu.memory_space<vmem>>, %arg1: memref<8x32xf32, #tpu.memory_space<vmem>>, %arg2: memref<32x8xf32, #tpu.memory_space<vmem>>, %arg3: memref<1x8xf32, #tpu.memory_space<vmem>>) attributes {dimension_semantics = [], scalar_prefetch = 0 : i64, scratch_operands = 0 : i64, tpu.core_type = #tpu.core_type<tc>} {
    %c0 = arith.constant 0 : index
    %c0_0 = arith.constant 0 : index
    %0 = vector.load %arg0[%c0, %c0_0] : memref<8x32xf32, #tpu.memory_space<vmem>>, vector<8x32xf32>
    %cst = arith.constant dense<0.000000e+00> : vector<32xf32>
    %1 = vector.multi_reduction <add>, %0, %cst [0] : vector<8x32xf32> to vector<32xf32>
    %2 = vector.shape_cast %1 : vector<32xf32> to vector<1x32xf32>
    %cst_1 = arith.constant 1.250000e-01 : f32
    %3 = vector.broadcast %cst_1 : f32 to vector<1x32xf32>
    %4 = arith.mulf %2, %3 : vector<1x32xf32>
    %c0_2 = arith.constant 0 : index
    %c0_3 = arith.constant 0 : index
    %5 = vector.load %arg1[%c0_2, %c0_3] : memref<8x32xf32, #tpu.memory_space<vmem>>, vector<8x32xf32>
    %cst_4 = arith.constant dense<0.000000e+00> : vector<1x8xf32>
    %6 = tpu.matmul %4, %5, %cst_4 {dimension_numbers = #tpu.dot_dimension_numbers<[1], [1], [0], [0], [0, 0, 1, 0], [], []>} : vector<1x32xf32>, vector<8x32xf32>, vector<1x8xf32> -> vector<1x8xf32>
    %cst_5 = arith.constant 0.000000e+00 : f32
    %7 = vector.broadcast %cst_5 : f32 to vector<1x8xf32>
    %8 = arith.maximumf %6, %7 : vector<1x8xf32>
    %c0_6 = arith.constant 0 : index
    %c0_7 = arith.constant 0 : index
    %9 = vector.load %arg2[%c0_6, %c0_7] : memref<32x8xf32, #tpu.memory_space<vmem>>, vector<32x8xf32>
    %cst_8 = arith.constant dense<0.000000e+00> : vector<1x32xf32>
    %10 = tpu.matmul %8, %9, %cst_8 {dimension_numbers = #tpu.dot_dimension_numbers<[1], [1], [0], [0], [0, 0, 1, 0], [], []>} : vector<1x8xf32>, vector<32x8xf32>, vector<1x32xf32> -> vector<1x32xf32>
    %cst_9 = arith.constant dense<0xFF800000> : vector<1xf32>
    %11 = vector.multi_reduction <maximumf>, %10, %cst_9 [1] : vector<1x32xf32> to vector<1xf32>
    %12 = vector.shape_cast %11 : vector<1xf32> to vector<1x1xf32>
    %13 = vector.broadcast %12 : vector<1x1xf32> to vector<1x32xf32>
    %14 = arith.subf %10, %13 : vector<1x32xf32>
    %15 = math.exp %14 : vector<1x32xf32>
    %cst_10 = arith.constant dense<0.000000e+00> : vector<1xf32>
    %16 = vector.multi_reduction <add>, %15, %cst_10 [1] : vector<1x32xf32> to vector<1xf32>
    %17 = vector.shape_cast %16 : vector<1xf32> to vector<1x1xf32>
    %18 = vector.broadcast %17 : vector<1x1xf32> to vector<1x32xf32>
    %19 = arith.divf %15, %18 : vector<1x32xf32>
    %c0_11 = arith.constant 0 : index
    %c0_12 = arith.constant 0 : index
    %20 = vector.load %arg0[%c0_11, %c0_12] : memref<8x32xf32, #tpu.memory_space<vmem>>, vector<8x32xf32>
    %cst_13 = arith.constant dense<0.000000e+00> : vector<1x8xf32>
    %21 = tpu.matmul %19, %20, %cst_13 {dimension_numbers = #tpu.dot_dimension_numbers<[1], [1], [0], [0], [0, 0, 1, 0], [], []>} : vector<1x32xf32>, vector<8x32xf32>, vector<1x8xf32> -> vector<1x8xf32>
    %c0_14 = arith.constant 0 : index
    %c0_15 = arith.constant 0 : index
    %22 = vector.load %arg3[%c0_14, %c0_15] : memref<1x8xf32, #tpu.memory_space<vmem>>, vector<1x8xf32>
    tpu.vector_store %arg3[%c0_14, %c0_15], %21 {strides = array<i32>} : memref<1x8xf32, #tpu.memory_space<vmem>>, vector<1x8xf32>,
    return
  }
}

</mosaic_0001>

<bundles_post_ra>
// kernel: tpu_custom_call.1
= control target key start
LH: loop header
LB: loop body
LE: loop exit
PB: predicated region body
PF: predicated region fallthrough
CT: control target
= control target key end

     0   :  { %vm16_vm0 = vcmask 261120   ;;  %v365_v3 = vmov 0.0   ;;  %vm366_vm1 = vmmov 0   ;;  %vm107_vm2 = vcmask 64512   ;;  %s422_s0 = inlined_call_operand.vmem [shape: f32[8,32], index: 0, kind: input, shape index: {}]   ;;  %s423_s1 = inlined_call_operand.vmem [shape: f32[8,32], index: 1, kind: input, shape index: {}]   ;;  %s424_s2 = inlined_call_operand.vmem [shape: f32[32,8], index: 2, kind: input, shape index: {}]   ;;  %s425_s3 = inlined_call_operand.hbm [shape: f32[1,8], index: 3, kind: output, shape index: {}]  }
   0x1   :  { %v15_v0 = vld [vmem:[%s422_s0] sm:$0xff]  ;;  %v106_v2 = vld [vmem:[%s424_s2 + $0x18] sm:$0xff]  ;;  %315 = vmatprep.subr.mxu0 %v365_v3  ;;  %317 = vmatprep.mubr.msk.f32.mxu0 %vm366_vm1, %v365_v3 }
   0x2   :  { %v25_v1 = vld [vmem:[%s423_s1] sm:$0xff]  ;;  %v17_v4 = vsel %vm16_vm0, %v15_v0, 0.0 }
   0x3   :  { %8 = vsyncpa [#allocation3], 0  ;;  %v18_v5 = vrot.slane %v17_v4, 4  ;;  %316 = vmatpush3.xpose.msk.msra.mxu0 %vm16_vm0, %v25_v1  ;;  %320 = vmatprep.subr.mxu1 %v365_v3  ;;  %v105_v7 = vld [vmem:[%s424_s2 + $0x10] sm:$0xff]  ;;  %v104_v10 = vld [vmem:[%s424_s2 + $0x8] sm:$0xff]  ;;  %vm193_vm3 = vcmask 253952  }
   0x4   :  { %321 = vmatpush3.xpose.msk.msra.mxu1 %vm107_vm2, %v106_v2  ;;  %328 = vmatprep.mubr.msk.f32.mxu1 %vm366_vm1, %v365_v3  ;;  %v103_v14 = vld [vmem:[%s424_s2] sm:$0xff]  ;;  %s367_s2 = smov [#allocation2]   ;;  %vm281_vm4 = vcmask 57344  }
   0x5   :  { %v19_v6 = vadd.f32 %v18_v5, %v17_v4  ;;  %322 = vmatprep.subr.mxu1 %v365_v3  ;;  %331 = vmatprep.subr.mxu0 %v365_v3  ;;  %s289_s22 = sshll.u32 %s367_s2, 4  ;;  %s290_s22 = int_to_ptr.vmem [resolvable:$true] %s289_s22 }
   0x6   :  { %s343_s23 = scalar_lea.vmem %s290_s22, 16  ;;  %s347_s24 = scalar_lea.vmem %s290_s22, 32 }
   0x7   :  { %v20_v8 = vrot.slane %v19_v6, 2  ;;  %p344_p0 = scmp.ne.s32.totalorder %s290_s22, %s343_s23  ;;  %p348_p1 = scmp.lt.s32.totalorder %s290_s22, %s290_s22 }
   0x8   :  { %323 = vmatpush3.xpose.msk.msra.mxu1 %vm107_vm2, %v105_v7  ;;  %p349_p2 = scmp.lt.s32.totalorder %s347_s24, %s343_s23 }
   0x9   :  { %v21_v9 = vadd.f32 %v20_v8, %v19_v6  ;;  %324 = vmatprep.subr.mxu1 %v365_v3 }
   0xa   :  { %p350_p3 = por %p349_p2, %p348_p1 }
   0xb   :  { %v22_v11 = vrot.slane %v21_v9, 1 }
   0xc   :  { %325 = vmatpush3.xpose.msk.msra.mxu1 %vm107_vm2, %v104_v10  ;;  %p351_p4 = pnand %p350_p3, %p344_p0 }
   0xd   :  { %v23_v12 = vadd.f32 %v22_v11, %v21_v9  ;;  %326 = vmatprep.subr.mxu1 %v365_v3 }
   0xf   :  { %v24_v13 = vmul.f32 0.125, %v23_v12 }
  0x10   :  { %327 = vmatpush3.xpose.msk.msra.mxu1 %vm107_vm2, %v103_v14 }
  0x11   :  { %318 = vmatmul.mubr.msk.f32.vlgmr.msra.gmra.mxu0 %vm16_vm0, %v24_v13 }
  0x12   :  { %332 = vmatpush3.xpose.msk.msra.mxu0 %vm16_vm0, %v15_v0  ;;  %333 = vmatprep.mubr.msk.f32.mxu0 %vm366_vm1, %v365_v3 }
  0xd1   :  { %v98_v15 = vpop.f32.mrf.mxu0 }
  0xd2   :  { %v102_v16 = vmax.f32 %v98_v15, 0.0 }
  0xd3   :  { %v319_v17 = vpop.f32.mrf.mxu0 }
  0xd4   :  { %329 = vmatmul.mubr.msk.f32.vlgmr.msra.gmra.mxu1 %vm107_vm2, %v102_v16 }
 0x194   :  { %v189_v18 = vpop.f32.mrf.mxu1 }
 0x195   :  { %v194_v19 = vsel %vm193_vm3, %v189_v18, -inf }
 0x196   :  { %195 = vmax.xlane.f32.xlu0 %v194_v19  ;;  %v330_v20 = vpop.f32.mrf.mxu1 }
 0x21f   :  { %v196_v21 = vpop.xlane.xlu0 %195 }
 0x220   :  { %v197_v22 = vsub.f32 %v189_v18, %v196_v21 }
 0x222   :  { %v198_v23 = vmul.f32 1.442695, %v197_v22 }
 0x224   :  { %339 = vpow2.f32 %v198_v23 }
 0x231   :  { %v340_v24 = vpop.eup %339 }
 0x232   :  { %v200_v25 = vsel %vm193_vm3, %v340_v24, 0.0 }
 0x233   :  { %201 = vadd.xlane.f32.xlu0 %v200_v25 }
 0x2bc   :  { %v202_v26 = vpop.xlane.xlu0 %201 }
 0x2bd   :  { %341 = vrcp.f32 %v202_v26 }
 0x2ca   :  { %v342_v27 = vpop.eup %341 }
 0x2cb   :  { %v204_v28 = vmul.f32 %v342_v27, %v340_v24 }
 0x2cd   :  { %334 = vmatmul.mubr.msk.f32.vlgmr.msra.gmra.mxu0 %vm16_vm0, %v204_v28 }
 0x38d   :  { %v277_v29 = vpop.f32.mrf.mxu0 }
 0x38e   :  { %282 = vst.msk [vmem:[#allocation2] sm:$0x1] %vm281_vm4, %v277_v29 }
 0x38f   :  { %v335_v30 = vpop.f32.mrf.mxu0 }
 0x390   :  { %354 = shalt.err (!%p351_p4)
}
 0x391   :  { %292 = dma.vmem_to_hbm [thread:$0]  %s290_s22, 16, %s425_s3, [#allocation3]  }
 0x392   :  { %363 = dma.done.wait [#allocation3], 16  }
 0x393   :  { %364 = vsyncadd [#allocation3], 4294967280 }
 0x394   :  { %296 = vsyncpa [#allocation3], 1 }

</bundles_post_ra>
